<compile_context>
chip_gen: v5e
topology: v5e:2x2
jax: 0.10.0
libtpu: 0.0.40
codegen_flags: <defaults>
</compile_context>

<pallas_src>
import jax
import jax.numpy as jnp
from jax.experimental import pallas as pl
from jax.experimental.pallas import tpu as pltpu


# ---------------------------------------------------------------------------
# Constants / planning helpers
# ---------------------------------------------------------------------------
_LANE = 512  # lane-dense last dim (multiple of 128)

# generation -> (max block rows, vmem_limit_bytes)
_PLAN = {
    7: (2048, 48 * 1024 * 1024),   # v7x: 64 MiB physical VMEM
    6: (2048, 64 * 1024 * 1024),   # v6e: 128 MiB physical VMEM
    5: (2048, 64 * 1024 * 1024),   # v5e/v5p: 128 MiB physical VMEM
    4: (1024, 32 * 1024 * 1024),
    0: (1024, 32 * 1024 * 1024),   # unknown: conservative
}


def _cdiv(a, b):
    return -(-a // b)


def _tpu_generation():
    """Best-effort TPU generation from device_kind; 0 = unknown."""
    try:
        kind = jax.devices()[0].device_kind.lower()
    except Exception:  # pragma: no cover
        return 0
    for g in (7, 6, 5, 4):
        if str(g) in kind:
            return g
    return 0


def _softplus(z):
    """Numerically stable log(1 + exp(z))."""
    return jnp.maximum(z, 0.0) + jnp.log1p(jnp.exp(-jnp.abs(z)))


# ---------------------------------------------------------------------------
# Kernels
# ---------------------------------------------------------------------------
def _make_reduce_kernel(block_rows, steps, lane, total, need_mask):
    """Per-chunk partial sums into a resident (1, 8, lane) output block."""
    last_full_row = total // lane
    rem = total % lane

    def kernel(pred_ref, tgt_ref, out_ref):
        c = pl.program_id(0)
        s = pl.program_id(1)

        @pl.when(s == 0)
        def _init():
            out_ref[...] = jnp.zeros_like(out_ref)

        p = pred_ref[...].astype(jnp.float32)
        t = tgt_ref[...].astype(jnp.float32)
        loss = _softplus(-t * p)  # (block_rows, lane)

        if need_mask:
            # Static `total`: mask out rows/lanes past the real data (covers
            # both partial boundary blocks and the sub-lane ragged tail).
            base = (c * steps + s) * block_rows
            row = base + jax.lax.broadcasted_iota(jnp.int32, loss.shape, 0)
            if rem == 0:
                valid = row < last_full_row
            else:
                lane_i = jax.lax.broadcasted_iota(jnp.int32, loss.shape, 1)
                valid = (row < last_full_row) | (
                    (row == last_full_row) & (lane_i < rem))
            loss = jnp.where(valid, loss, 0.0)

        if block_rows % 8 == 0:
            # Sum over row-groups only: pure VPU adds into an (8, lane)
            # lane/sublane-resident partial (no per-step XLU reduce).
            partial = loss.reshape(block_rows // 8, 8, lane).sum(axis=0)
        else:
            # Tiny-input case (rows < 8): collapse rows, place in sublane 0.
            colsum = loss.sum(axis=0, keepdims=True)                 # (1, lane)
            row0 = jax.lax.broadcasted_iota(jnp.int32, (8, lane), 0) == 0
            partial = jnp.where(row0, colsum, 0.0)

        out_ref[...] += partial[None, :, :]

    return kernel


def _soft_margin_elemwise_kernel(pred_ref, tgt_ref, out_ref):
    """reduction='none' path: per-element loss (boundary writes are dropped)."""
    p = pred_ref[...].astype(jnp.float32)
    t = tgt_ref[...].astype(jnp.float32)
    out_ref[...] = _softplus(-t * p).astype(out_ref.dtype)


# ---------------------------------------------------------------------------
# Wrapper
# ---------------------------------------------------------------------------
def soft_margin_loss(pred, target, reduction="mean"):
    """Pallas implementation of nn.SoftMarginLoss forward (any input shape)."""
    assert pred.shape == target.shape
    if reduction not in ("mean", "sum", "none"):
        raise ValueError(f"unknown reduction: {reduction}")

    orig_shape = pred.shape
    total = int(pred.size)

    out_dtype = jnp.result_type(pred.dtype, target.dtype)
    if not jnp.issubdtype(out_dtype, jnp.floating):
        out_dtype = jnp.float32

    if total == 0:
        if reduction == "none":
            return jnp.zeros(orig_shape, out_dtype)
        if reduction == "sum":
            return jnp.zeros((), jnp.float32)
        return jnp.full((), jnp.nan, jnp.float32)  # torch: mean of empty = nan

    gen = _tpu_generation()
    max_block_rows, vmem_limit = _PLAN.get(gen, _PLAN[0])

    rows = _cdiv(total, _LANE)
    aligned = (total % _LANE == 0)

    if aligned:
        # Zero-copy: reshape of a contiguous array.
        pred2 = pred.reshape(rows, _LANE)
        tgt2 = target.reshape(rows, _LANE)
    else:
        # Pad only to the next 512 multiple (padded values are masked /
        # sliced off); no whole-block padding.
        pad = rows * _LANE - total
        pred2 = jnp.pad(pred.reshape(-1), (0, pad)).reshape(rows, _LANE)
        tgt2 = jnp.pad(target.reshape(-1), (0, pad)).reshape(rows, _LANE)

    # Block rows: multiple of 8 (<= rows) for normal sizes, or the full row
    # extent for tiny inputs (legal: block dim == full array dim).
    if rows < 8:
        block_rows = rows
    else:
        block_rows = min(max_block_rows, (rows // 8) * 8)
    nblocks = _cdiv(rows, block_rows)

    if reduction == "none":
        out = pl.pallas_call(
            _soft_margin_elemwise_kernel,
            out_shape=jax.ShapeDtypeStruct((rows, _LANE), out_dtype),
            grid_spec=pltpu.PrefetchScalarGridSpec(
                num_scalar_prefetch=0,
                grid=(nblocks,),
                in_specs=[
                    pl.BlockSpec((block_rows, _LANE), lambda i: (i, 0)),
                    pl.BlockSpec((block_rows, _LANE), lambda i: (i, 0)),
                ],
                out_specs=pl.BlockSpec((block_rows, _LANE), lambda i: (i, 0)),
            ),
            compiler_params=pltpu.CompilerParams(
                dimension_semantics=("parallel",),
                vmem_limit_bytes=vmem_limit,
            ),
        )(pred2, tgt2)
        if aligned:
            return out.reshape(orig_shape)
        return out.reshape(-1)[:total].reshape(orig_shape)

    # ---- mean / sum ----
    # 2-way chunk split only on v7x-class parts (2 TensorCores) and only when
    # it is safe (even block count -> no fully-OOB blocks) and worthwhile.
    if gen >= 7 and nblocks >= 4 and nblocks % 2 == 0:
        n_chunks = 2
        steps = nblocks // 2
    else:
        n_chunks = 1
        steps = nblocks

    need_mask = (n_chunks * steps * block_rows * _LANE != total)
    kernel = _make_reduce_kernel(block_rows, steps, _LANE, total, need_mask)

    partials = pl.pallas_call(
        kernel,
        out_shape=jax.ShapeDtypeStruct((n_chunks, 8, _LANE), jnp.float32),
        grid_spec=pltpu.PrefetchScalarGridSpec(
            num_scalar_prefetch=0,
            grid=(n_chunks, steps),
            in_specs=[
                pl.BlockSpec((block_rows, _LANE),
                             lambda c, s: (c * steps + s, 0)),
                pl.BlockSpec((block_rows, _LANE),
                             lambda c, s: (c * steps + s, 0)),
            ],
            # Same block per chunk across the 'arbitrary' axis -> resident
            # per-chunk accumulator; distinct block per 'parallel' chunk.
            out_specs=pl.BlockSpec((1, 8, _LANE), lambda c, s: (c, 0, 0)),
        ),
        compiler_params=pltpu.CompilerParams(
            dimension_semantics=("parallel", "arbitrary"),
            vmem_limit_bytes=vmem_limit,
        ),
    )(pred2, tgt2)

    total_sum = jnp.sum(partials)  # tiny (n_chunks, 8, 512) collapse
    if reduction == "mean":
        total_sum = total_sum / float(total)
    return total_sum.astype(out_dtype)


# ---------------------------------------------------------------------------
# Reference + main
# ---------------------------------------------------------------------------
def _reference(pred, target, reduction="mean"):
    z = -target.astype(jnp.float32) * pred.astype(jnp.float32)
    loss = jnp.maximum(z, 0.0) + jnp.log1p(jnp.exp(-jnp.abs(z)))  # stable
    if reduction == "mean":
        return loss.mean()
    if reduction == "sum":
        return loss.sum()
    return loss


if __name__ == "__main__":
    key = jax.random.PRNGKey(0)
    kp, kt = jax.random.split(key)
    # Small shapes: batch of 128 "samples" with 256 logits each.
    pred = jax.random.normal(kp, (128, 256), dtype=jnp.float32)
    # targets in {-1, +1}, as SoftMarginLoss expects
    target = jnp.where(
        jax.random.uniform(kt, (128, 256)) > 0.5, 1.0, -1.0
    ).astype(jnp.float32)

    # reduction='mean' (module default)
    out_mean = jax.block_until_ready(soft_margin_loss(pred, target, "mean"))
    ref_mean = _reference(pred, target, "mean")
    assert jnp.allclose(out_mean, ref_mean, rtol=1e-5, atol=1e-5), (out_mean, ref_mean)

    # reduction='sum'
    out_sum = jax.block_until_ready(soft_margin_loss(pred, target, "sum"))
    ref_sum = _reference(pred, target, "sum")
    assert jnp.allclose(out_sum, ref_sum, rtol=1e-5, atol=1e-3), (out_sum, ref_sum)

    # reduction='none'
    out_none = jax.block_until_ready(soft_margin_loss(pred, target, "none"))
    ref_none = _reference(pred, target, "none")
    assert jnp.allclose(out_none, ref_none, rtol=1e-5, atol=1e-5)

    # Ragged size (total % 512 != 0) exercises the in-kernel mask + tail path.
    kp2, kt2 = jax.random.split(kt)
    pred_r = jax.random.normal(kp2, (3, 7, 11), dtype=jnp.float32)
    target_r = jnp.where(
        jax.random.uniform(kt2, (3, 7, 11)) > 0.5, 1.0, -1.0
    ).astype(jnp.float32)
    out_rm = jax.block_until_ready(soft_margin_loss(pred_r, target_r, "mean"))
    assert jnp.allclose(out_rm, _reference(pred_r, target_r, "mean"),
                        rtol=1e-5, atol=1e-5)
    out_rn = jax.block_until_ready(soft_margin_loss(pred_r, target_r, "none"))
    assert jnp.allclose(out_rn, _reference(pred_r, target_r, "none"),
                        rtol=1e-5, atol=1e-5)

    print("KERNEL_OK")
</pallas_src>

<mosaic_0001>
module attributes {stable_mosaic.version = 11 : i64} {
  func.func @kernel(%arg0: i32, %arg1: i32, %arg2: memref<64x512xf32, #tpu.memory_space<vmem>>, %arg3: memref<64x512xf32, #tpu.memory_space<vmem>>, %arg4: memref<1x8x512xf32, #tpu.memory_space<vmem>>) attributes {dimension_semantics = [#tpu.dimension_semantics<parallel>, #tpu.dimension_semantics<arbitrary>], iteration_bounds = array<i64: 1, 1>, scalar_prefetch = 0 : i64, scratch_operands = 0 : i64, tpu.core_type = #tpu.core_type<tc>, window_params = [{transform_indices = @transform_0, window_bounds = array<i64: 64, 512>}, {transform_indices = @transform_1, window_bounds = array<i64: 64, 512>}, {transform_indices = @transform_2, window_bounds = array<i64: 1, 8, 512>}]} {
    %c0_i32 = arith.constant 0 : i32
    %0 = arith.cmpi eq, %arg1, %c0_i32 : i32
    %1 = arith.extui %0 : i1 to i32
    %c0_i32_0 = arith.constant 0 : i32
    %2 = arith.cmpi ne, %1, %c0_i32_0 : i32
    scf.if %2 {
      %cst_13 = arith.constant 0.000000e+00 : f32
      %22 = vector.broadcast %cst_13 : f32 to vector<1x8x512xf32>
      %c0_14 = arith.constant 0 : index
      %c0_15 = arith.constant 0 : index
      %c0_16 = arith.constant 0 : index
      %23 = vector.load %arg4[%c0_14, %c0_15, %c0_16] : memref<1x8x512xf32, #tpu.memory_space<vmem>>, vector<1x8x512xf32>
      tpu.vector_store %arg4[%c0_14, %c0_15, %c0_16], %22 {strides = array<i32>} : memref<1x8x512xf32, #tpu.memory_space<vmem>>, vector<1x8x512xf32>,
    } else {
    }
    %c0 = arith.constant 0 : index
    %c0_1 = arith.constant 0 : index
    %3 = vector.load %arg2[%c0, %c0_1] : memref<64x512xf32, #tpu.memory_space<vmem>>, vector<64x512xf32>
    %c0_2 = arith.constant 0 : index
    %c0_3 = arith.constant 0 : index
    %4 = vector.load %arg3[%c0_2, %c0_3] : memref<64x512xf32, #tpu.memory_space<vmem>>, vector<64x512xf32>
    %cst = arith.constant 0.000000e+00 : f32
    %5 = vector.broadcast %cst : f32 to vector<64x512xf32>
    %6 = arith.subf %5, %4 : vector<64x512xf32>
    %7 = arith.mulf %6, %3 : vector<64x512xf32>
    %cst_4 = arith.constant 0.000000e+00 : f32
    %8 = vector.broadcast %cst_4 : f32 to vector<64x512xf32>
    %9 = arith.maximumf %7, %8 : vector<64x512xf32>
    %10 = math.absf %7 : vector<64x512xf32>
    %cst_5 = arith.constant 0.000000e+00 : f32
    %11 = vector.broadcast %cst_5 : f32 to vector<64x512xf32>
    %12 = arith.subf %11, %10 : vector<64x512xf32>
    %13 = math.exp %12 : vector<64x512xf32>
    %14 = math.log1p %13 : vector<64x512xf32>
    %15 = arith.addf %9, %14 : vector<64x512xf32>
    %16 = vector.shape_cast %15 : vector<64x512xf32> to vector<8x8x512xf32>
    %cst_6 = arith.constant dense<0.000000e+00> : vector<8x512xf32>
    %17 = vector.multi_reduction <add>, %16, %cst_6 [0] : vector<8x8x512xf32> to vector<8x512xf32>
    %c0_7 = arith.constant 0 : index
    %c0_8 = arith.constant 0 : index
    %c0_9 = arith.constant 0 : index
    %18 = vector.load %arg4[%c0_7, %c0_8, %c0_9] : memref<1x8x512xf32, #tpu.memory_space<vmem>>, vector<1x8x512xf32>
    %19 = vector.shape_cast %17 : vector<8x512xf32> to vector<1x8x512xf32>
    %20 = arith.addf %18, %19 : vector<1x8x512xf32>
    %c0_10 = arith.constant 0 : index
    %c0_11 = arith.constant 0 : index
    %c0_12 = arith.constant 0 : index
    %21 = vector.load %arg4[%c0_10, %c0_11, %c0_12] : memref<1x8x512xf32, #tpu.memory_space<vmem>>, vector<1x8x512xf32>
    tpu.vector_store %arg4[%c0_10, %c0_11, %c0_12], %20 {strides = array<i32>} : memref<1x8x512xf32, #tpu.memory_space<vmem>>, vector<1x8x512xf32>,
    return
  }
  func.func @transform_0(%arg0: i32, %arg1: i32) -> (i32, i32) {
    %c1_i32 = arith.constant 1 : i32
    %0 = arith.muli %arg0, %c1_i32 : i32
    %1 = arith.addi %0, %arg1 : i32
    %c0_i32 = arith.constant 0 : i32
    %c0_i32_0 = arith.constant 0 : i32
    return %1, %c0_i32 : i32, i32
  }
  func.func @transform_1(%arg0: i32, %arg1: i32) -> (i32, i32) {
    %c1_i32 = arith.constant 1 : i32
    %0 = arith.muli %arg0, %c1_i32 : i32
    %1 = arith.addi %0, %arg1 : i32
    %c0_i32 = arith.constant 0 : i32
    %c0_i32_0 = arith.constant 0 : i32
    return %1, %c0_i32 : i32, i32
  }
  func.func @transform_2(%arg0: i32, %arg1: i32) -> (i32, i32, i32) {
    %c0_i32 = arith.constant 0 : i32
    %c0_i32_0 = arith.constant 0 : i32
    %c0_i32_1 = arith.constant 0 : i32
    return %arg0, %c0_i32, %c0_i32_0 : i32, i32, i32
  }
}

</mosaic_0001>

<bundles_post_ra>
// kernel: tpu_custom_call.1
= control target key start
LH: loop header
LB: loop body
LE: loop exit
PB: predicated region body
PF: predicated region fallthrough
CT: control target
= control target key end

     0   :  { %7 = vsyncpa [#allocation3], 0  ;;  %s1948_s0 = inlined_call_operand.hbm [shape: f32[64,512], index: 0, kind: input, shape index: {}]   ;;  %s1949_s1 = inlined_call_operand.hbm [shape: f32[64,512], index: 1, kind: input, shape index: {}]   ;;  %s1950_s2 = inlined_call_operand.hbm [shape: f32[1,8,512], index: 2, kind: output, shape index: {}]  }
   0x1   :  { %8 = vsyncpa [#allocation6], 0 }
   0x2   :  { %9 = vsyncpa [#allocation4], 0  ;;  %s19_s11 = sshll.u32 %s1948_s0, 4  ;;  %s944_s12 = smov [#allocation2]   ;;  %s20_s11 = int_to_ptr.hbm [resolvable:$true] %s19_s11 }
   0x3   :  { %s21_s13 = sshll.u32 %s944_s12, 4  ;;  %s37_s16 = sshll.u32 %s1949_s1, 4  ;;  %s22_s13 = int_to_ptr.vmem [resolvable:$true] %s21_s13  ;;  %s38_s16 = int_to_ptr.hbm [resolvable:$true] %s37_s16 }
   0x4   :  { %s945_s17 = smov 512   ;;  %s946_s18 = smov 32  }
   0x5   :  { %27 = dma.hbm_to_vmem [thread:$0]  %s20_s11, 4096, %s22_s13, [#allocation3], %s945_s17, %s945_s17, %s946_s18  }
   0x6   :  { %s947_s19 = smov [#allocation5]  }
   0x7   :  { %s39_s20 = sshll.u32 %s947_s19, 4  ;;  %s40_s20 = int_to_ptr.vmem [resolvable:$true] %s39_s20 }
   0x8   :  { %45 = dma.hbm_to_vmem [thread:$0]  %s38_s16, 4096, %s40_s20, [#allocation6], %s945_s17, %s945_s17, %s946_s18  }
   0x9   :  { %938 = dma.done.wait [#allocation3], 4096  }
   0xa   :  { %939 = vsyncadd [#allocation3], 4294963200 }
   0xb   :  { %940 = dma.done.wait [#allocation6], 4096  }
   0xc   :  { %941 = vsyncadd [#allocation6], 4294963200  ;;  %v98_v0 = vld [vmem:[#allocation5] sm:$0xff]  ;;  %v99_v1 = vld [vmem:[#allocation5 + $0x8] sm:$0xff]  ;;  %s948_s0 = smov [#allocation7]   ;;  %s721_s23 = sshll.u32 %s1950_s2, 4  ;;  %s722_s23 = int_to_ptr.hbm [resolvable:$true] %s721_s23 }
   0xd   :  { %v100_v2 = vld [vmem:[#allocation5 + $0x10] sm:$0xff]  ;;  %v66_v3 = vld [vmem:[#allocation2] sm:$0xff]  ;;  %v67_v4 = vld [vmem:[#allocation2 + $0x8] sm:$0xff]  ;;  %v130_v6 = vsub.f32 0.0, %v98_v0  ;;  %v131_v11 = vsub.f32 0.0, %v99_v1  ;;  %s719_s1 = sshll.u32 %s948_s0, 4  ;;  %s720_s1 = int_to_ptr.vmem [resolvable:$true] %s719_s1 }
   0xe   :  { %v101_v5 = vld [vmem:[#allocation5 + $0x18] sm:$0xff]  ;;  %v68_v7 = vld [vmem:[#allocation2 + $0x10] sm:$0xff]  ;;  %v102_v8 = vld [vmem:[#allocation5 + $0x20] sm:$0xff]  ;;  %v132_v16 = vsub.f32 0.0, %v100_v2 }
   0xf   :  { %v970_v9 = vld [vmem:[#allocation5 + $0x28] sm:$0xff]  ;;  %v972_v10 = vld [vmem:[#allocation5 + $0x30] sm:$0xff]  ;;  %v69_v12 = vld [vmem:[#allocation2 + $0x18] sm:$0xff]  ;;  %v133_v21 = vsub.f32 0.0, %v101_v5  ;;  %v134_v26 = vsub.f32 0.0, %v102_v8  ;;  %v994_v29 = vmul.f32 %v130_v6, %v66_v3  ;;  %v1005_v37 = vmul.f32 %v131_v11, %v67_v4 }
  0x10   :  { %v974_v13 = vld [vmem:[#allocation5 + $0x38] sm:$0xff]  ;;  %v976_v14 = vld [vmem:[#allocation5 + $0x40] sm:$0xff]  ;;  %v978_v15 = vld [vmem:[#allocation5 + $0x48] sm:$0xff]  ;;  %v135_v27 = vsub.f32 0.0, %v970_v9  ;;  %v136_v28 = vsub.f32 0.0, %v972_v10  ;;  %v1016_v45 = vmul.f32 %v132_v16, %v68_v7 }
  0x11   :  { %v70_v17 = vld [vmem:[#allocation2 + $0x20] sm:$0xff]  ;;  %v980_v18 = vld [vmem:[#allocation5 + $0x50] sm:$0xff]  ;;  %v982_v19 = vld [vmem:[#allocation5 + $0x58] sm:$0xff]  ;;  %2044 = vst [vmem:[#allocation11_spill] sm:$0xff] %v994_v29  ;;  %v137_v34 = vsub.f32 0.0, %v974_v13  ;;  %v138_v35 = vsub.f32 0.0, %v976_v14  ;;  %v1027_v53 = vmul.f32 %v133_v21, %v69_v12 }
  0x12   :  { %v984_v20 = vld [vmem:[#allocation5 + $0x60] sm:$0xff]  ;;  %v71_v22 = vld [vmem:[#allocation2 + $0x28] sm:$0xff]  ;;  %v988_v24 = vld [vmem:[#allocation5 + $0x70] sm:$0xff]  ;;  %v139_v36 = vsub.f32 0.0, %v978_v15  ;;  %2045 = vst [vmem:[#allocation12_spill] sm:$0xff] %v1005_v37  ;;  %v140_v42 = vsub.f32 0.0, %v980_v18  ;;  %v1036_v63 = vmul.f32 %v134_v26, %v70_v17 }
  0x13   :  { %v986_v23 = vld [vmem:[#allocation5 + $0x68] sm:$0xff]  ;;  %v990_v25 = vld [vmem:[#allocation5 + $0x78] sm:$0xff]  ;;  %v72_v30 = vld [vmem:[#allocation2 + $0x30] sm:$0xff]  ;;  %v141_v43 = vsub.f32 0.0, %v982_v19  ;;  %v142_v44 = vsub.f32 0.0, %v984_v20  ;;  %2046 = vst [vmem:[#allocation13_spill] sm:$0xff] %v1016_v45  ;;  %v1047_v7 = vmul.f32 %v135_v27, %v71_v22 }
  0x14   :  { %v996_v31 = vld [vmem:[#allocation5 + $0x80] sm:$0xff]  ;;  %v998_v32 = vld [vmem:[#allocation5 + $0x88] sm:$0xff]  ;;  %v1000_v33 = vld [vmem:[#allocation5 + $0x90] sm:$0xff]  ;;  %v143_v50 = vsub.f32 0.0, %v986_v23  ;;  %v144_v51 = vsub.f32 0.0, %v988_v24  ;;  %v145_v52 = vsub.f32 0.0, %v990_v25  ;;  %v1054_v14 = vmul.f32 %v136_v28, %v72_v30 }
  0x15   :  { %v73_v38 = vld [vmem:[#allocation2 + $0x38] sm:$0xff]  ;;  %v1009_v40 = vld [vmem:[#allocation5 + $0xa0] sm:$0xff]  ;;  %v1011_v41 = vld [vmem:[#allocation5 + $0xa8] sm:$0xff]  ;;  %2047 = vst [vmem:[#allocation14_spill] sm:$0xff] %v1027_v53  ;;  %v146_v60 = vsub.f32 0.0, %v996_v31  ;;  %v147_v61 = vsub.f32 0.0, %v998_v32 }
  0x16   :  { %v1007_v39 = vld [vmem:[#allocation5 + $0x98] sm:$0xff]  ;;  %v74_v46 = vld [vmem:[#allocation2 + $0x40] sm:$0xff]  ;;  %v1018_v47 = vld [vmem:[#allocation5 + $0xb0] sm:$0xff]  ;;  %v148_v62 = vsub.f32 0.0, %v1000_v33  ;;  %2048 = vst [vmem:[#allocation15_spill] sm:$0xff] %v1036_v63  ;;  %v150_v5 = vsub.f32 0.0, %v1009_v40  ;;  %v1058_v21 = vmul.f32 %v137_v34, %v73_v38 }
  0x17   :  { %v1020_v48 = vld [vmem:[#allocation5 + $0xb8] sm:$0xff]  ;;  %v1022_v49 = vld [vmem:[#allocation5 + $0xc0] sm:$0xff]  ;;  %v75_v54 = vld [vmem:[#allocation2 + $0x48] sm:$0xff]  ;;  %v149_v4 = vsub.f32 0.0, %v1007_v39  ;;  %v151_v6 = vsub.f32 0.0, %v1011_v41  ;;  %2049 = vst [vmem:[#allocation16_spill] sm:$0xff] %v1047_v7  ;;  %v1063_v28 = vmul.f32 %v138_v35, %v74_v46 }
  0x18   :  { %v76_v55 = vld [vmem:[#allocation2 + $0x50] sm:$0xff]  ;;  %v77_v56 = vld [vmem:[#allocation2 + $0x58] sm:$0xff]  ;;  %v123_v57 = vld [vmem:[#allocation5 + $0xc8] sm:$0xff]  ;;  %v152_v11 = vsub.f32 0.0, %v1018_v47  ;;  %v153_v12 = vsub.f32 0.0, %v1020_v48  ;;  %v154_v13 = vsub.f32 0.0, %v1022_v49  ;;  %v1066_v39 = vmul.f32 %v139_v36, %v75_v54 }
  0x19   :  { %v1029_v58 = vld [vmem:[#allocation5 + $0xd0] sm:$0xff]  ;;  %v1031_v59 = vld [vmem:[#allocation5 + $0xd8] sm:$0xff]  ;;  %v78_v0 = vld [vmem:[#allocation2 + $0x60] sm:$0xff]  ;;  %2050 = vst [vmem:[#allocation17_spill] sm:$0xff] %v1054_v14  ;;  %v155_v18 = vsub.f32 0.0, %v123_v57  ;;  %v1068_v34 = vmul.f32 %v140_v42, %v76_v55  ;;  %v1070_v38 = vmul.f32 %v141_v43, %v77_v56 }
  0x1a   :  { %v1038_v1 = vld [vmem:[#allocation5 + $0xe0] sm:$0xff]  ;;  %v1040_v2 = vld [vmem:[#allocation5 + $0xe8] sm:$0xff]  ;;  %v1042_v3 = vld [vmem:[#allocation5 + $0xf0] sm:$0xff]  ;;  %v156_v19 = vsub.f32 0.0, %v1029_v58  ;;  %v157_v20 = vsub.f32 0.0, %v1031_v59  ;;  %2051 = vst [vmem:[#allocation18_spill] sm:$0xff] %v1058_v21  ;;  %v1072_v47 = vmul.f32 %v142_v44, %v78_v0 }
  0x1b   :  { %v79_v8 = vld [vmem:[#allocation2 + $0x68] sm:$0xff]  ;;  %v80_v9 = vld [vmem:[#allocation2 + $0x70] sm:$0xff]  ;;  %v1049_v10 = vld [vmem:[#allocation5 + $0xf8] sm:$0xff]  ;;  %v158_v25 = vsub.f32 0.0, %v1038_v1  ;;  %v159_v26 = vsub.f32 0.0, %v1040_v2  ;;  %v160_v27 = vsub.f32 0.0, %v1042_v3 }
  0x1c   :  { %v81_v15 = vld [vmem:[#allocation2 + $0x78] sm:$0xff]  ;;  %v82_v16 = vld [vmem:[#allocation2 + $0x80] sm:$0xff]  ;;  %v83_v17 = vld [vmem:[#allocation2 + $0x88] sm:$0xff]  ;;  %2052 = vst [vmem:[#allocation19_spill] sm:$0xff] %v1063_v28  ;;  %v161_v33 = vsub.f32 0.0, %v1049_v10  ;;  %v1074_v48 = vmul.f32 %v143_v50, %v79_v8  ;;  %v1076_v49 = vmul.f32 %v144_v51, %v80_v9 }
  0x1d   :  { %v84_v22 = vld [vmem:[#allocation2 + $0x90] sm:$0xff]  ;;  %v85_v23 = vld [vmem:[#allocation2 + $0x98] sm:$0xff]  ;;  %v86_v24 = vld [vmem:[#allocation2 + $0xa0] sm:$0xff]  ;;  %2053 = vst [vmem:[#allocation20_spill] sm:$0xff] %v1066_v39  ;;  %v1078_v35 = vmul.f32 %v145_v52, %v81_v15  ;;  %v1080_v46 = vmul.f32 %v146_v60, %v82_v16  ;;  %v1082_v57 = vmul.f32 %v147_v61, %v83_v17  ;;  %v229_v17 = vand.u32 2147483647, %v1027_v53 }
  0x1e   :  { %v87_v30 = vld [vmem:[#allocation2 + $0xa8] sm:$0xff]  ;;  %v88_v31 = vld [vmem:[#allocation2 + $0xb0] sm:$0xff]  ;;  %v89_v32 = vld [vmem:[#allocation2 + $0xb8] sm:$0xff]  ;;  %2054 = vst [vmem:[#allocation21_spill] sm:$0xff] %v1068_v34  ;;  %v1084_v36 = vmul.f32 %v148_v62, %v84_v22  ;;  %v1086_v42 = vmul.f32 %v149_v4, %v85_v23  ;;  %v1088_v43 = vmul.f32 %v150_v5, %v86_v24  ;;  %v231_v22 = vand.u32 2147483647, %v1047_v7 }
  0x1f   :  { %2055 = vst [vmem:[#allocation22_spill] sm:$0xff] %v1070_v38  ;;  %v90_v40 = vld [vmem:[#allocation2 + $0xc0] sm:$0xff]  ;;  %v91_v41 = vld [vmem:[#allocation2 + $0xc8] sm:$0xff]  ;;  %v1090_v54 = vmul.f32 %v151_v6, %v87_v30  ;;  %v1092_v44 = vmul.f32 %v152_v11, %v88_v31  ;;  %v1094_v50 = vmul.f32 %v153_v12, %v89_v32  ;;  %v92_v15 = vld [vmem:[#allocation2 + $0xd0] sm:$0xff]  ;;  %v226_v31 = vand.u32 2147483647, %v994_v29 }
  0x20   :  { %2056 = vst [vmem:[#allocation23_spill] sm:$0xff] %v1072_v47  ;;  %v1096_v51 = vmul.f32 %v154_v13, %v90_v40  ;;  %v1098_v52 = vmul.f32 %v155_v18, %v91_v41  ;;  %v93_v23 = vld [vmem:[#allocation2 + $0xd8] sm:$0xff]  ;;  %v94_v24 = vld [vmem:[#allocation2 + $0xe0] sm:$0xff]  ;;  %v95_v41 = vld [vmem:[#allocation2 + $0xe8] sm:$0xff]  ;;  %v1128_v30 = vmul.f32 %v156_v19, %v92_v15  ;;  %v227_v32 = vand.u32 2147483647, %v1005_v37 }
  0x21   :  { %2057 = vst [vmem:[#allocation24_spill] sm:$0xff] %v1074_v48  ;;  %v96_v13 = vld [vmem:[#allocation2 + $0xf0] sm:$0xff]  ;;  %v97_v12 = vld [vmem:[#allocation2 + $0xf8] sm:$0xff]  ;;  %v228_v40 = vand.u32 2147483647, %v1016_v45  ;;  %v1135_v16 = vmul.f32 %v157_v20, %v93_v23  ;;  %v1142_v58 = vmul.f32 %v158_v25, %v94_v24  ;;  %v1149_v59 = vmul.f32 %v159_v26, %v95_v41 }
  0x22   :  { %2058 = vst [vmem:[#allocation25_spill] sm:$0xff] %v1076_v49  ;;  %v230_v18 = vand.u32 2147483647, %v1036_v63  ;;  %v232_v19 = vand.u32 2147483647, %v1054_v14  ;;  %v1156_v1 = vmul.f32 %v160_v27, %v96_v13  ;;  %v1163_v2 = vmul.f32 %v161_v33, %v97_v12 }
  0x23   :  { %2059 = vst [vmem:[#allocation26_spill] sm:$0xff] %v1078_v35  ;;  %v233_v15 = vand.u32 2147483647, %v1058_v21  ;;  %v234_v11 = vand.u32 2147483647, %v1063_v28  ;;  %v258_v13 = vsub.f32 0.0, %v226_v31 }
  0x24   :  { %2060 = vst [vmem:[#allocation27_spill] sm:$0xff] %v1080_v46  ;;  %v235_v20 = vand.u32 2147483647, %v1066_v39  ;;  %v236_v23 = vand.u32 2147483647, %v1068_v34  ;;  %v259_v5 = vsub.f32 0.0, %v227_v32 }
  0x25   :  { %2061 = vst [vmem:[#allocation28_spill] sm:$0xff] %v1082_v57  ;;  %v237_v9 = vand.u32 2147483647, %v1070_v38  ;;  %v238_v25 = vand.u32 2147483647, %v1072_v47  ;;  %v260_v33 = vsub.f32 0.0, %v228_v40 }
  0x26   :  { %2062 = vst [vmem:[#allocation29_spill] sm:$0xff] %v1084_v36  ;;  %v239_v24 = vand.u32 2147483647, %v1074_v48  ;;  %v240_v8 = vand.u32 2147483647, %v1076_v49  ;;  %v261_v60 = vsub.f32 0.0, %v229_v17 }
  0x27   :  { %2063 = vst [vmem:[#allocation30_spill] sm:$0xff] %v1086_v42  ;;  %v241_v26 = vand.u32 2147483647, %v1078_v35  ;;  %v242_v41 = vand.u32 2147483647, %v1080_v46  ;;  %v262_v32 = vsub.f32 0.0, %v230_v18 }
  0x28   :  { %2064 = vst [vmem:[#allocation31_spill] sm:$0xff] %v1088_v43  ;;  %v243_v6 = vand.u32 2147483647, %v1082_v57  ;;  %v244_v3 = vand.u32 2147483647, %v1084_v36  ;;  %v266_v18 = vsub.f32 0.0, %v234_v11 }
  0x29   :  { %2065 = vst [vmem:[#allocation32_spill] sm:$0xff] %v1090_v54  ;;  %v245_v27 = vand.u32 2147483647, %v1086_v42  ;;  %v246_v0 = vand.u32 2147483647, %v1088_v43  ;;  %v263_v43 = vsub.f32 0.0, %v231_v22 }
  0x2a   :  { %2066 = vst [vmem:[#allocation33_spill] sm:$0xff] %v1092_v44  ;;  %v247_v10 = vand.u32 2147483647, %v1090_v54  ;;  %v248_v62 = vand.u32 2147483647, %v1092_v44  ;;  %v264_v44 = vsub.f32 0.0, %v232_v19 }
  0x2b   :  { %2067 = vst [vmem:[#allocation34_spill] sm:$0xff] %v1094_v50  ;;  %v249_v61 = vand.u32 2147483647, %v1094_v50  ;;  %v250_v55 = vand.u32 2147483647, %v1096_v51  ;;  %v265_v50 = vsub.f32 0.0, %v233_v15 }
  0x2c   :  { %2068 = vst [vmem:[#allocation35_spill] sm:$0xff] %v1096_v51  ;;  %v251_v31 = vand.u32 2147483647, %v1098_v52  ;;  %v290_v42 = vmul.f32 1.442695, %v258_v13  ;;  %v268_v19 = vsub.f32 0.0, %v236_v23 }
  0x2d   :  { %2069 = vst [vmem:[#allocation36_spill] sm:$0xff] %v1098_v52  ;;  %v292_v54 = vmul.f32 1.442695, %v259_v5  ;;  %v252_v12 = vand.u32 2147483647, %v1128_v30  ;;  %v267_v5 = vsub.f32 0.0, %v235_v20 }
  0x2e   :  { %2070 = vst [vmem:[#allocation37_spill] sm:$0xff] %v1128_v30  ;;  %v294_v36 = vmul.f32 1.442695, %v260_v33  ;;  %v253_v56 = vand.u32 2147483647, %v1135_v16  ;;  %738 = vpow2.f32 %v290_v42  ;;  %v270_v15 = vsub.f32 0.0, %v238_v25 }
  0x2f   :  { %2071 = vst [vmem:[#allocation38_spill] sm:$0xff] %v1135_v16  ;;  %v296_v51 = vmul.f32 1.442695, %v261_v60  ;;  %v254_v52 = vand.u32 2147483647, %v1142_v58  ;;  %740 = vpow2.f32 %v292_v54  ;;  %v269_v16 = vsub.f32 0.0, %v237_v9 }
  0x30   :  { %2072 = vst [vmem:[#allocation39_spill] sm:$0xff] %v1142_v58  ;;  %v298_v4 = vmul.f32 1.442695, %v262_v32  ;;  %v255_v22 = vand.u32 2147483647, %v1149_v59  ;;  %742 = vpow2.f32 %v294_v36  ;;  %v271_v58 = vsub.f32 0.0, %v239_v24 }
  0x31   :  { %2073 = vst [vmem:[#allocation40_spill] sm:$0xff] %v1149_v59  ;;  %v300_v13 = vmul.f32 1.442695, %v263_v43  ;;  %v256_v40 = vand.u32 2147483647, %v1156_v1  ;;  %744 = vpow2.f32 %v296_v51  ;;  %v272_v11 = vsub.f32 0.0, %v240_v8 }
  0x32   :  { %2074 = vst [vmem:[#allocation41_spill] sm:$0xff] %v1156_v1  ;;  %v302_v33 = vmul.f32 1.442695, %v264_v44  ;;  %v257_v17 = vand.u32 2147483647, %v1163_v2  ;;  %746 = vpow2.f32 %v298_v4  ;;  %v273_v32 = vsub.f32 0.0, %v241_v26 }
  0x33   :  { %2075 = vst [vmem:[#allocation42_spill] sm:$0xff] %v1163_v2  ;;  %v304_v60 = vmul.f32 1.442695, %v265_v50  ;;  %v306_v42 = vmul.f32 1.442695, %v266_v18  ;;  %748 = vpow2.f32 %v300_v13  ;;  %v274_v43 = vsub.f32 0.0, %v242_v41 }
  0x34   :  { %v308_v20 = vmul.f32 1.442695, %v267_v5  ;;  %v1188_v54 = vpop.eup %738  ;;  %v275_v1 = vsub.f32 0.0, %v243_v6  ;;  %750 = vpow2.f32 %v302_v33  ;;  %v310_v36 = vmul.f32 1.442695, %v268_v19 }
  0x35   :  { %v1190_v44 = vpop.eup %740  ;;  %v276_v23 = vsub.f32 0.0, %v244_v3  ;;  %v277_v9 = vsub.f32 0.0, %v245_v27  ;;  %752 = vpow2.f32 %v304_v60  ;;  %v312_v50 = vmul.f32 1.442695, %v269_v16 }
  0x36   :  { %v1192_v51 = vpop.eup %742  ;;  %v278_v4 = vsub.f32 0.0, %v246_v0  ;;  %v279_v25 = vsub.f32 0.0, %v247_v10  ;;  %754 = vpow2.f32 %v306_v42  ;;  %v314_v8 = vmul.f32 1.442695, %v270_v15 }
  0x37   :  { %v1194_v24 = vpop.eup %744  ;;  %v280_v26 = vsub.f32 0.0, %v248_v62  ;;  %v281_v18 = vsub.f32 0.0, %v249_v61  ;;  %756 = vpow2.f32 %v308_v20  ;;  %v316_v6 = vmul.f32 1.442695, %v271_v58 }
  0x38   :  { %v1196_v41 = vpop.eup %746  ;;  %v282_v5 = vsub.f32 0.0, %v250_v55  ;;  %v283_v13 = vsub.f32 0.0, %v251_v31  ;;  %758 = vpow2.f32 %v310_v36  ;;  %v318_v3 = vmul.f32 1.442695, %v272_v11 }
  0x39   :  { %v1198_v27 = vpop.eup %748  ;;  %v284_v16 = vsub.f32 0.0, %v252_v12  ;;  %v285_v19 = vsub.f32 0.0, %v253_v56  ;;  %760 = vpow2.f32 %v312_v50  ;;  %v320_v0 = vmul.f32 1.442695, %v273_v32 }
  0x3a   :  { %v1200_v10 = vpop.eup %750  ;;  %v286_v33 = vsub.f32 0.0, %v254_v52  ;;  %v287_v60 = vsub.f32 0.0, %v255_v22  ;;  %762 = vpow2.f32 %v314_v8  ;;  %v322_v61 = vmul.f32 1.442695, %v274_v43 }
  0x3b   :  { %v1202_v62 = vpop.eup %752  ;;  %v288_v58 = vsub.f32 0.0, %v256_v40  ;;  %v289_v15 = vsub.f32 0.0, %v257_v17  ;;  %764 = vpow2.f32 %v316_v6  ;;  %v324_v55 = vmul.f32 1.442695, %v275_v1 }
  0x3c   :  { %v1204_v31 = vpop.eup %754  ;;  %766 = vpow2.f32 %v318_v3  ;;  %v326_v42 = vmul.f32 1.442695, %v276_v23  ;;  %v328_v12 = vmul.f32 1.442695, %v277_v9  ;;  %v330_v56 = vmul.f32 1.442695, %v278_v4 }
  0x3d   :  { %v1206_v11 = vpop.eup %756  ;;  %768 = vpow2.f32 %v320_v0  ;;  %v332_v32 = vmul.f32 1.442695, %v279_v25  ;;  %v334_v52 = vmul.f32 1.442695, %v280_v26  ;;  %v357_v22 = vmul.f32 -0.5, %v1188_v54 }
  0x3e   :  { %v1209_v20 = vpop.eup %758  ;;  %770 = vpow2.f32 %v322_v61  ;;  %v336_v40 = vmul.f32 1.442695, %v281_v18  ;;  %v338_v17 = vmul.f32 1.442695, %v282_v5  ;;  %v366_v1 = vmul.f32 -0.5, %v1190_v44 }
  0x3f   :  { %v1212_v43 = vpop.eup %760  ;;  %772 = vpow2.f32 %v324_v55  ;;  %v340_v36 = vmul.f32 1.442695, %v283_v13  ;;  %v342_v23 = vmul.f32 1.442695, %v284_v16  ;;  %v344_v9 = vmul.f32 1.442695, %v285_v19 }
  0x40   :  { %v1214_v50 = vpop.eup %762  ;;  %774 = vpow2.f32 %v326_v42  ;;  %v346_v4 = vmul.f32 1.442695, %v286_v33  ;;  %v348_v25 = vmul.f32 1.442695, %v287_v60  ;;  %v375_v8 = vmul.f32 -0.5, %v1192_v51 }
  0x41   :  { %v1217_v26 = vpop.eup %764  ;;  %776 = vpow2.f32 %v328_v12  ;;  %v350_v18 = vmul.f32 1.442695, %v288_v58  ;;  %v352_v6 = vmul.f32 1.442695, %v289_v15  ;;  %v358_v5 = vadd.f32 1.0, %v357_v22 }
  0x42   :  { %v1219_v3 = vpop.eup %766  ;;  %778 = vpow2.f32 %v330_v56  ;;  %v354_v13 = vadd.f32 1.0, %v1188_v54  ;;  %v367_v16 = vadd.f32 1.0, %v366_v1  ;;  %v384_v19 = vmul.f32 -0.5, %v1194_v24 }
  0x43   :  { %v1223_v0 = vpop.eup %768  ;;  %780 = vpow2.f32 %v332_v32  ;;  %v363_v60 = vadd.f32 1.0, %v1190_v44  ;;  %v393_v61 = vmul.f32 -0.5, %v1196_v41  ;;  %v372_v55 = vadd.f32 1.0, %v1192_v51 }
  0x44   :  { %v1228_v58 = vpop.eup %770  ;;  %782 = vpow2.f32 %v334_v52  ;;  %v376_v42 = vadd.f32 1.0, %v375_v8  ;;  %v1235_v56 = vmul.f32 %v1188_v54, %v358_v5  ;;  %v402_v22 = vmul.f32 -0.5, %v1198_v27 }
  0x45   :  { %v1232_v12 = vpop.eup %772  ;;  %784 = vpow2.f32 %v336_v40  ;;  %v1242_v52 = vmul.f32 %v1190_v44, %v367_v16  ;;  %v381_v15 = vadd.f32 1.0, %v1194_v24  ;;  %v385_v33 = vadd.f32 1.0, %v384_v19 }
  0x46   :  { %v1239_v1 = vpop.eup %774  ;;  %786 = vpow2.f32 %v338_v17  ;;  %v394_v5 = vadd.f32 1.0, %v393_v61  ;;  %v411_v2 = vmul.f32 -0.5, %v1200_v10  ;;  %v1252_v59 = vmul.f32 %v1192_v51, %v376_v42 }
  0x47   :  { %v1245_v8 = vpop.eup %776  ;;  %788 = vpow2.f32 %v340_v36  ;;  %v390_v17 = vadd.f32 1.0, %v1196_v41  ;;  %v420_v16 = vmul.f32 -0.5, %v1202_v62  ;;  %v399_v19 = vadd.f32 1.0, %v1198_v27 }
  0x48   :  { %v1249_v32 = vpop.eup %778  ;;  %790 = vpow2.f32 %v342_v23  ;;  %v403_v61 = vadd.f32 1.0, %v402_v22  ;;  %v1263_v23 = vmul.f32 %v1194_v24, %v385_v33  ;;  %v405_v42 = vand.u32 2147483647, %v1198_v27 }
  0x49   :  { %v1256_v30 = vpop.eup %780  ;;  %792 = vpow2.f32 %v344_v9  ;;  %v429_v57 = vmul.f32 -0.5, %v1204_v31  ;;  %v1270_v9 = vmul.f32 %v1196_v41, %v394_v5  ;;  %v408_v36 = vadd.f32 1.0, %v1200_v10 }
  0x4a   :  { %v1260_v40 = vpop.eup %782  ;;  %794 = vpow2.f32 %v346_v4  ;;  %2076 = vst [vmem:[#allocation43_spill] sm:$0xff] %v1263_v23  ;;  %v412_v35 = vadd.f32 1.0, %v411_v2  ;;  %v414_v4 = vand.u32 2147483647, %v1200_v10  ;;  %v421_v33 = vadd.f32 1.0, %v420_v16 }
  0x4b   :  { %v1267_v46 = vpop.eup %784  ;;  %796 = vpow2.f32 %v348_v25  ;;  %v438_v49 = vmul.f32 -0.5, %v1206_v11  ;;  %v1280_v47 = vmul.f32 %v1198_v27, %v403_v61  ;;  %v417_v25 = vadd.f32 1.0, %v1202_v62 }
  0x4c   :  { %v1273_v22 = vpop.eup %786  ;;  %798 = vpow2.f32 %v350_v18  ;;  %v447_v5 = vmul.f32 -0.5, %v1209_v20  ;;  %v423_v2 = vand.u32 2147483647, %v1202_v62  ;;  %v426_v18 = vadd.f32 1.0, %v1204_v31 }
  0x4d   :  { %v1277_v48 = vpop.eup %788  ;;  %800 = vpow2.f32 %v352_v6  ;;  %v430_v16 = vadd.f32 1.0, %v429_v57  ;;  %v1291_v6 = vmul.f32 %v1200_v10, %v412_v35  ;;  %v432_v27 = vand.u32 2147483647, %v1204_v31 }
  0x4e   :  { %v1284_v38 = vpop.eup %790  ;;  %802 = vlog2.f32 %v354_v13  ;;  %v456_v61 = vmul.f32 -0.5, %v1212_v43  ;;  %v1298_v13 = vmul.f32 %v1202_v62, %v421_v33  ;;  %v435_v28 = vadd.f32 1.0, %v1206_v11 }
  0x4f   :  { %2077 = vst [vmem:[#allocation44_spill] sm:$0xff] %v1284_v38  ;;  %v1288_v34 = vpop.eup %792  ;;  %804 = vlog2.f32 %v363_v60  ;;  %v439_v21 = vadd.f32 1.0, %v438_v49  ;;  %v2082_v60 = vand.u32 2147483647, %v1188_v54  ;;  %v441_v10 = vand.u32 2147483647, %v1206_v11 }
  0x50   :  { %2078 = vst [vmem:[#allocation45_spill] sm:$0xff] %v1288_v34  ;;  %v1295_v39 = vpop.eup %794  ;;  %806 = vlog2.f32 %v372_v55  ;;  %v448_v14 = vadd.f32 1.0, %v447_v5  ;;  %v465_v55 = vmul.f32 -0.5, %v1214_v50  ;;  %v2086_v62 = vand.u32 2147483647, %v1190_v44 }
  0x51   :  { %2079 = vst [vmem:[#allocation46_spill] sm:$0xff] %v1295_v39  ;;  %v1301_v57 = vpop.eup %796  ;;  %vm1305_vm0 = vcmp.lt.f32.partialorder %v2082_v60, 0.0004427343  ;;  %808 = vlog2.f32 %v381_v15  ;;  %v2087_v49 = vmov 0  ;;  %v1320_v54 = vmul.f32 %v1204_v31, %v430_v16 }
  0x52   :  { %2080 = vst [vmem:[#allocation47_spill] sm:$0xff] %v1298_v13  ;;  %v1311_v7 = vpop.eup %798  ;;  %vm1315_vm1 = vcmp.lt.f32.partialorder %v2086_v62, 0.0004427343  ;;  %810 = vlog2.f32 %v390_v17  ;;  %v444_v33 = vadd.f32 1.0, %v1209_v20  ;;  %v474_v15 = vmul.f32 -0.5, %v1217_v26 }
  0x53   :  { %2081 = vst [vmem:[#allocation48_spill] sm:$0xff] %v1301_v57  ;;  %v2088_v49 = vsel %vm1315_vm1, 4294967295, %v2087_v49  ;;  %v1324_v60 = vpop.eup %800  ;;  %812 = vlog2.f32 %v399_v19  ;;  %v450_v5 = vand.u32 2147483647, %v1209_v20  ;;  %v457_v63 = vadd.f32 1.0, %v456_v61 }
  0x54   :  { %2085 = vst [vmem:[#allocation49_spill] sm:$0xff] %v1311_v7  ;;  %v483_v44 = vmul.f32 -0.5, %v1219_v3  ;;  %v803_v62 = vpop.eup %802  ;;  %v2091_v53 = vand.u32 2147483647, %v1192_v51  ;;  %814 = vlog2.f32 %v408_v36  ;;  %v1335_v31 = vmul.f32 %v1206_v11, %v439_v21 }
  0x55   :  { %2089 = vst [vmem:[#allocation50_spill] sm:$0xff] %v2088_v49  ;;  %v453_v16 = vadd.f32 1.0, %v1212_v43  ;;  %v459_v19 = vand.u32 2147483647, %v1212_v43  ;;  %v805_v45 = vpop.eup %804  ;;  %v2094_v61 = vand.u32 2147483647, %v1194_v24  ;;  %816 = vlog2.f32 %v417_v25 }
  0x56   :  { %2090 = vst [vmem:[#allocation51_spill] sm:$0xff] %v1324_v60  ;;  %vm1330_vm2 = vcmp.lt.f32.partialorder %v2091_v53, 0.0004427343  ;;  %v1346_v53 = vmul.f32 %v1209_v20, %v448_v14  ;;  %v462_v51 = vadd.f32 1.0, %v1214_v50  ;;  %v466_v36 = vadd.f32 1.0, %v465_v55  ;;  %v807_v21 = vpop.eup %806 }
  0x57   :  { %vm1341_vm3 = vcmp.lt.f32.partialorder %v2094_v61, 0.0004427343  ;;  %v2097_v11 = vand.u32 2147483647, %v1196_v41  ;;  %vm1355_vm5 = vcmp.lt.f32.partialorder %v405_v42, 0.0004427343  ;;  %818 = vlog2.f32 %v426_v18  ;;  %v809_v20 = vpop.eup %808 }
  0x58   :  { %v2100_v24 = vmov 0  ;;  %v468_v25 = vand.u32 2147483647, %v1214_v50  ;;  %v475_v61 = vadd.f32 1.0, %v474_v15  ;;  %v492_v14 = vmul.f32 -0.5, %v1223_v0  ;;  %v811_v60 = vpop.eup %810 }
  0x59   :  { %vm1351_vm4 = vcmp.lt.f32.partialorder %v2097_v11, 0.0004427343  ;;  %v2101_v24 = vsel %vm1355_vm5, 4294967295, %v2100_v24  ;;  %vm1361_vm6 = vcmp.lt.f32.partialorder %v414_v4, 0.0004427343  ;;  %v2102_v55 = vmov 0  ;;  %v813_v57 = vpop.eup %812 }
  0x5a   :  { %v2103_v55 = vsel %vm1361_vm6, 4294967295, %v2102_v55  ;;  %820 = vlog2.f32 %v435_v28  ;;  %v1366_v41 = vmul.f32 %v1212_v43, %v457_v63  ;;  %v471_v42 = vadd.f32 1.0, %v1217_v26 }
  0x5b   :  { %2104 = vst [vmem:[#allocation52_spill] sm:$0xff] %v2103_v55  ;;  %v484_v11 = vadd.f32 1.0, %v483_v44  ;;  %v1369_v7 = vmul.f32 0.6931472, %v803_v62  ;;  %vm1371_vm7 = vcmp.lt.f32.partialorder %v423_v2, 0.0004427343  ;;  %822 = vlog2.f32 %v444_v33  ;;  %v815_v44 = vpop.eup %814 }
  0x5c   :  { %2105 = vst [vmem:[#allocation53_spill] sm:$0xff] %v1366_v41  ;;  %v2106_v18 = vmov 0  ;;  %v477_v4 = vand.u32 2147483647, %v1217_v26  ;;  %v480_v15 = vadd.f32 1.0, %v1219_v3  ;;  %824 = vlog2.f32 %v453_v16  ;;  %v817_v34 = vpop.eup %816 }
  0x5d   :  { %v2107_v18 = vsel %vm1371_vm7, 4294967295, %v2106_v18  ;;  %v1377_v28 = vmul.f32 0.6931472, %v805_v45  ;;  %vm1379_vm8 = vcmp.lt.f32.partialorder %v432_v27, 0.0004427343  ;;  %v1384_v43 = vmul.f32 %v1214_v50, %v466_v36 }
  0x5e   :  { %2108 = vst [vmem:[#allocation54_spill] sm:$0xff] %v2107_v18  ;;  %v486_v2 = vand.u32 2147483647, %v1219_v3  ;;  %vm1387_vm9 = vcmp.lt.f32.partialorder %v441_v10, 0.0004427343  ;;  %v2112_v33 = vmov 0  ;;  %v1392_v62 = vmul.f32 %v1217_v26, %v475_v61  ;;  %v819_v61 = vpop.eup %818 }
  0x5f   :  { %2111 = vst [vmem:[#allocation55_spill] sm:$0xff] %v1384_v43  ;;  %v2113_v33 = vsel %vm1387_vm9, 4294967295, %v2112_v33  ;;  %v489_v45 = vadd.f32 1.0, %v1223_v0  ;;  %v493_v27 = vadd.f32 1.0, %v492_v14  ;;  %v495_v39 = vand.u32 2147483647, %v1223_v0 }
  0x60   :  { %v1396_v16 = vmul.f32 0.6931472, %v807_v21  ;;  %vm1398_vm10 = vcmp.lt.f32.partialorder %v450_v5, 0.0004427343  ;;  %vm1402_vm11 = vcmp.lt.f32.partialorder %v459_v19, 0.0004427343  ;;  %826 = vlog2.f32 %v462_v51  ;;  %v821_v14 = vpop.eup %820 }
  0x61   :  { %v2116_v10 = vmov 0  ;;  %v1407_v26 = vmul.f32 %v1219_v3, %v484_v11  ;;  %v498_v36 = vadd.f32 1.0, %v1228_v58  ;;  %v1414_v5 = vmul.f32 0.6931472, %v809_v20  ;;  %v823_v20 = vpop.eup %822 }
  0x62   :  { %v2117_v10 = vsel %vm1402_vm11, 4294967295, %v2116_v10  ;;  %828 = vlog2.f32 %v471_v42  ;;  %v501_v19 = vmul.f32 -0.5, %v1228_v58  ;;  %v1421_v51 = vmul.f32 0.6931472, %v811_v60 }
  0x63   :  { %2118 = vst [vmem:[#allocation56_spill] sm:$0xff] %v2117_v10  ;;  %v1423_v11 = vmul.f32 0.6931472, %v813_v57  ;;  %vm1425_vm12 = vcmp.lt.f32.partialorder %v468_v25, 0.0004427343  ;;  %830 = vlog2.f32 %v480_v15  ;;  %v2123_v42 = vmov 0  ;;  %v825_v57 = vpop.eup %824 }
  0x64   :  { %2119 = vst [vmem:[#allocation57_spill] sm:$0xff] %v1414_v5  ;;  %v1429_v21 = vmul.f32 0.6931472, %v815_v44  ;;  %vm1431_vm13 = vcmp.lt.f32.partialorder %v477_v4, 0.0004427343  ;;  %832 = vlog2.f32 %v489_v45  ;;  %v1436_v49 = vmul.f32 %v1223_v0, %v493_v27 }
  0x65   :  { %2120 = vst [vmem:[#allocation58_spill] sm:$0xff] %v1423_v11  ;;  %v2124_v42 = vsel %vm1431_vm13, 4294967295, %v2123_v42  ;;  %v507_v60 = vadd.f32 1.0, %v1232_v12  ;;  %v1443_v15 = vmul.f32 0.6931472, %v817_v34  ;;  %834 = vlog2.f32 %v498_v36 }
  0x66   :  { %2125 = vst [vmem:[#allocation59_spill] sm:$0xff] %v1436_v49  ;;  %v504_v4 = vand.u32 2147483647, %v1228_v58  ;;  %v1450_v0 = vmul.f32 0.6931472, %v819_v61  ;;  %v2127_v45 = vmov 0  ;;  %v827_v25 = vpop.eup %826  ;;  %v2224_v29 = vsel %vm1361_vm6, %v1291_v6, %v1429_v21 }
  0x67   :  { %2126 = vst [vmem:[#allocation60_spill] sm:$0xff] %v1443_v15  ;;  %vm1452_vm14 = vcmp.lt.f32.partialorder %v486_v2, 0.0004427343  ;;  %vm1456_vm15 = vcmp.lt.f32.partialorder %v495_v39, 0.0004427343  ;;  %v2129_v27 = vmov 0  ;;  %836 = vlog2.f32 %v507_v60 }
  0x68   :  { %v2128_v45 = vsel %vm1452_vm14, 4294967295, %v2127_v45  ;;  %v2130_v27 = vsel %vm1456_vm15, 4294967295, %v2129_v27  ;;  %v502_v34 = vadd.f32 1.0, %v501_v19  ;;  %v516_v36 = vadd.f32 1.0, %v1239_v1  ;;  %v829_v44 = vpop.eup %828  ;;  %v2234_v21 = vld [vmem:[#allocation20_spill] sm:$0xff] }
  0x69   :  { %2131 = vst [vmem:[#allocation61_spill] sm:$0xff] %v2130_v27  ;;  %v1469_v61 = vmul.f32 0.6931472, %v821_v14  ;;  %v510_v39 = vmul.f32 -0.5, %v1232_v12  ;;  %v1476_v5 = vmul.f32 0.6931472, %v823_v20  ;;  %v831_v3 = vpop.eup %830 }
  0x6a   :  { %v1478_v23 = vmul.f32 0.6931472, %v825_v57  ;;  %vm1484_vm5 = vcmp.lt.f32.partialorder %v504_v4, 0.0004427343  ;;  %v2133_v2 = vmov 0  ;;  %v525_v55 = vadd.f32 1.0, %v1245_v8  ;;  %v833_v19 = vpop.eup %832 }
  0x6b   :  { %v2134_v2 = vsel %vm1484_vm5, 4294967295, %v2133_v2  ;;  %v513_v11 = vand.u32 2147483647, %v1232_v12  ;;  %v1494_v60 = vmul.f32 0.6931472, %v827_v25  ;;  %v1497_v57 = vmul.f32 %v1228_v58, %v502_v34  ;;  %v835_v4 = vpop.eup %834 }
  0x6c   :  { %2132 = vst [vmem:[#allocation62_spill] sm:$0xff] %v1478_v23  ;;  %838 = vlog2.f32 %v516_v36  ;;  %v1503_v15 = vmul.f32 0.6931472, %v829_v44  ;;  %v511_v13 = vadd.f32 1.0, %v510_v39  ;;  %v519_v18 = vmul.f32 -0.5, %v1239_v1  ;;  %v2219_v37 = vld [vmem:[#allocation58_spill] sm:$0xff] }
  0x6d   :  { %2135 = vst [vmem:[#allocation63_spill] sm:$0xff] %v2134_v2  ;;  %v528_v34 = vmul.f32 -0.5, %v1245_v8  ;;  %v534_v36 = vadd.f32 1.0, %v1249_v32  ;;  %v1516_v14 = vmul.f32 0.6931472, %v831_v3  ;;  %v2140_v39 = vmov 0  ;;  %v837_v20 = vpop.eup %836 }
  0x6e   :  { %2136 = vst [vmem:[#allocation64_spill] sm:$0xff] %v1494_v60  ;;  %v1518_v44 = vmul.f32 0.6931472, %v833_v19  ;;  %vm1520_vm9 = vcmp.lt.f32.partialorder %v513_v11, 0.0004427343  ;;  %840 = vlog2.f32 %v525_v55  ;;  %v543_v3 = vadd.f32 1.0, %v1256_v30 }
  0x6f   :  { %2137 = vst [vmem:[#allocation65_spill] sm:$0xff] %v1497_v57  ;;  %v2141_v39 = vsel %vm1520_vm9, 4294967295, %v2140_v39  ;;  %v1528_v58 = vmul.f32 0.6931472, %v835_v4  ;;  %v522_v23 = vand.u32 2147483647, %v1239_v1  ;;  %v1537_v19 = vmul.f32 %v1232_v12, %v511_v13 }
  0x70   :  { %2138 = vst [vmem:[#allocation66_spill] sm:$0xff] %v1516_v14  ;;  %v520_v55 = vadd.f32 1.0, %v519_v18  ;;  %842 = vlog2.f32 %v534_v36  ;;  %v529_v10 = vadd.f32 1.0, %v528_v34  ;;  %v531_v25 = vand.u32 2147483647, %v1245_v8 }
  0x71   :  { %2139 = vst [vmem:[#allocation67_spill] sm:$0xff] %v1518_v44  ;;  %v537_v4 = vmul.f32 -0.5, %v1249_v32  ;;  %v552_v60 = vadd.f32 1.0, %v1260_v40  ;;  %v1550_v13 = vmul.f32 0.6931472, %v837_v20  ;;  %v546_v18 = vmul.f32 -0.5, %v1256_v30 }
  0x72   :  { %2142 = vst [vmem:[#allocation68_spill] sm:$0xff] %v2141_v39  ;;  %v839_v41 = vpop.eup %838  ;;  %vm1557_vm13 = vcmp.lt.f32.partialorder %v522_v23, 0.0004427343  ;;  %v2146_v36 = vmov 0  ;;  %844 = vlog2.f32 %v543_v3  ;;  %v561_v43 = vadd.f32 1.0, %v1267_v46 }
  0x73   :  { %2143 = vst [vmem:[#allocation69_spill] sm:$0xff] %v1528_v58  ;;  %v2147_v36 = vsel %vm1557_vm13, 4294967295, %v2146_v36  ;;  %v1562_v14 = vmul.f32 0.6931472, %v839_v41  ;;  %v1565_v20 = vmul.f32 %v1239_v1, %v520_v55  ;;  %v540_v12 = vand.u32 2147483647, %v1249_v32 }
  0x74   :  { %2144 = vst [vmem:[#allocation70_spill] sm:$0xff] %v1537_v19  ;;  %v841_v11 = vpop.eup %840  ;;  %v555_v44 = vmul.f32 -0.5, %v1260_v40  ;;  %v1570_v2 = vmul.f32 %v1245_v8, %v529_v10  ;;  %vm1572_vm5 = vcmp.lt.f32.partialorder %v531_v25, 0.0004427343  ;;  %v2152_v23 = vmov 0 }
  0x75   :  { %2145 = vst [vmem:[#allocation71_spill] sm:$0xff] %v1550_v13  ;;  %v2153_v23 = vsel %vm1572_vm5, 4294967295, %v2152_v23  ;;  %v538_v3 = vadd.f32 1.0, %v537_v4  ;;  %846 = vlog2.f32 %v552_v60  ;;  %v547_v41 = vadd.f32 1.0, %v546_v18 }
  0x76   :  { %2148 = vst [vmem:[#allocation72_spill] sm:$0xff] %v2147_v36  ;;  %v843_v34 = vpop.eup %842  ;;  %v549_v55 = vand.u32 2147483647, %v1256_v30  ;;  %v558_v58 = vand.u32 2147483647, %v1260_v40  ;;  %848 = vlog2.f32 %v561_v43  ;;  %v564_v8 = vmul.f32 -0.5, %v1267_v46 }
  0x77   :  { %2149 = vst [vmem:[#allocation73_spill] sm:$0xff] %v1562_v14  ;;  %v1582_v57 = vmul.f32 0.6931472, %v841_v11  ;;  %v570_v10 = vadd.f32 1.0, %v1273_v22  ;;  %vm1590_vm15 = vcmp.lt.f32.partialorder %v540_v12, 0.0004427343  ;;  %v1598_v43 = vmul.f32 %v1249_v32, %v538_v3 }
  0x78   :  { %2150 = vst [vmem:[#allocation74_spill] sm:$0xff] %v1565_v20  ;;  %v2156_v25 = vmov 0  ;;  %v556_v4 = vadd.f32 1.0, %v555_v44  ;;  %v567_v18 = vand.u32 2147483647, %v1267_v46  ;;  %v845_v1 = vpop.eup %844  ;;  %v573_v13 = vmul.f32 -0.5, %v1273_v22 }
  0x79   :  { %2151 = vst [vmem:[#allocation75_spill] sm:$0xff] %v1570_v2  ;;  %v2157_v25 = vsel %vm1590_vm15, 4294967295, %v2156_v25  ;;  %v1595_v11 = vmul.f32 0.6931472, %v843_v34  ;;  %v579_v19 = vadd.f32 1.0, %v1277_v48  ;;  %v1603_v36 = vmul.f32 %v1256_v30, %v547_v41  ;;  %v2168_v34 = vld [vmem:[#allocation44_spill] sm:$0xff] }
  0x7a   :  { %2154 = vst [vmem:[#allocation76_spill] sm:$0xff] %v2153_v23  ;;  %vm1605_vm13 = vcmp.lt.f32.partialorder %v549_v55, 0.0004427343  ;;  %v2162_v12 = vmov 0  ;;  %vm1609_vm9 = vcmp.lt.f32.partialorder %v558_v58, 0.0004427343  ;;  %850 = vlog2.f32 %v570_v10 }
  0x7b   :  { %2155 = vst [vmem:[#allocation77_spill] sm:$0xff] %v1582_v57  ;;  %v2163_v12 = vsel %vm1605_vm13, 4294967295, %v2162_v12  ;;  %v2165_v44 = vmov 0  ;;  %v588_v60 = vadd.f32 1.0, %v2168_v34  ;;  %v847_v14 = vpop.eup %846  ;;  %v565_v3 = vadd.f32 1.0, %v564_v8  ;;  %v2174_v20 = vld [vmem:[#allocation45_spill] sm:$0xff] }
  0x7c   :  { %2158 = vst [vmem:[#allocation78_spill] sm:$0xff] %v2157_v25  ;;  %v2166_v44 = vsel %vm1609_vm9, 4294967295, %v2165_v44  ;;  %v582_v30 = vmul.f32 -0.5, %v1277_v48  ;;  %v1619_v41 = vmul.f32 0.6931472, %v845_v1  ;;  %v1622_v55 = vmul.f32 %v1260_v40, %v556_v4  ;;  %v849_v49 = vpop.eup %848  ;;  %v2177_v2 = vld [vmem:[#allocation46_spill] sm:$0xff] }
  0x7d   :  { %2159 = vst [vmem:[#allocation79_spill] sm:$0xff] %v1595_v11  ;;  %vm1624_vm14 = vcmp.lt.f32.partialorder %v567_v18, 0.0004427343  ;;  %v2171_v58 = vmov 0  ;;  %v597_v39 = vadd.f32 1.0, %v2174_v20  ;;  %v574_v10 = vadd.f32 1.0, %v573_v13 }
  0x7e   :  { %2160 = vst [vmem:[#allocation80_spill] sm:$0xff] %v1598_v43  ;;  %v2172_v58 = vsel %vm1624_vm14, 4294967295, %v2171_v58  ;;  %v576_v32 = vand.u32 2147483647, %v1273_v22  ;;  %852 = vlog2.f32 %v579_v19  ;;  %v1634_v1 = vmul.f32 0.6931472, %v847_v14 }
  0x7f   :  { %2161 = vst [vmem:[#allocation81_spill] sm:$0xff] %v1603_v36  ;;  %v585_v40 = vand.u32 2147483647, %v1277_v48  ;;  %854 = vlog2.f32 %v588_v60  ;;  %v591_v4 = vmul.f32 -0.5, %v2168_v34  ;;  %v1639_v18 = vmul.f32 %v1267_v46, %v565_v3  ;;  %v2179_v14 = vld [vmem:[#allocation48_spill] sm:$0xff]  ;;  %v2241_v3 = vld [vmem:[#allocation22_spill] sm:$0xff] }
  0x80   :  { %2164 = vst [vmem:[#allocation82_spill] sm:$0xff] %v2163_v12  ;;  %v583_v57 = vadd.f32 1.0, %v582_v30  ;;  %856 = vlog2.f32 %v597_v39  ;;  %v606_v23 = vadd.f32 1.0, %v2177_v2  ;;  %v1642_v25 = vmul.f32 0.6931472, %v849_v49  ;;  %v851_v11 = vpop.eup %850 }
  0x81   :  { %2167 = vst [vmem:[#allocation83_spill] sm:$0xff] %v2166_v44  ;;  %v594_v13 = vand.u32 2147483647, %v2168_v34  ;;  %v600_v19 = vmul.f32 -0.5, %v2174_v20  ;;  %v615_v8 = vadd.f32 1.0, %v2179_v14  ;;  %v1652_v46 = vmul.f32 %v1273_v22, %v574_v10 }
  0x82   :  { %2169 = vst [vmem:[#allocation44_spill] sm:$0xff] %v1619_v41  ;;  %vm1654_vm15 = vcmp.lt.f32.partialorder %v576_v32, 0.0004427343  ;;  %v2180_v39 = vmov 0  ;;  %858 = vlog2.f32 %v606_v23  ;;  %vm1662_vm5 = vcmp.lt.f32.partialorder %v585_v40, 0.0004427343 }
  0x83   :  { %2170 = vst [vmem:[#allocation84_spill] sm:$0xff] %v1622_v55  ;;  %v2181_v39 = vsel %vm1654_vm15, 4294967295, %v2180_v39  ;;  %v592_v30 = vadd.f32 1.0, %v591_v4  ;;  %v609_v60 = vmul.f32 -0.5, %v2177_v2  ;;  %v1668_v22 = vmul.f32 %v1277_v48, %v583_v57  ;;  %v2184_v23 = vld [vmem:[#allocation49_spill] sm:$0xff]  ;;  %v2187_v55 = vld [vmem:[#allocation51_spill] sm:$0xff] }
  0x84   :  { %2173 = vst [vmem:[#allocation85_spill] sm:$0xff] %v2172_v58  ;;  %v853_v41 = vpop.eup %852  ;;  %860 = vlog2.f32 %v615_v8  ;;  %v618_v32 = vmul.f32 -0.5, %v2179_v14  ;;  %v624_v10 = vadd.f32 1.0, %v2184_v23  ;;  %v1676_v49 = vmul.f32 0.6931472, %v851_v11 }
  0x85   :  { %2175 = vst [vmem:[#allocation45_spill] sm:$0xff] %v1634_v1  ;;  %v855_v36 = vpop.eup %854  ;;  %vm1678_vm9 = vcmp.lt.f32.partialorder %v594_v13, 0.0004427343  ;;  %v601_v1 = vadd.f32 1.0, %v600_v19  ;;  %v603_v57 = vand.u32 2147483647, %v2174_v20  ;;  %v1688_v58 = vmul.f32 %v2168_v34, %v592_v30 }
  0x86   :  { %2176 = vst [vmem:[#allocation86_spill] sm:$0xff] %v1639_v18  ;;  %v857_v48 = vpop.eup %856  ;;  %862 = vlog2.f32 %v624_v10  ;;  %v627_v8 = vmul.f32 -0.5, %v2184_v23  ;;  %v633_v44 = vadd.f32 1.0, %v2187_v55  ;;  %v1685_v12 = vmul.f32 0.6931472, %v853_v41 }
  0x87   :  { %2178 = vst [vmem:[#allocation46_spill] sm:$0xff] %v1642_v25  ;;  %v610_v11 = vadd.f32 1.0, %v609_v60  ;;  %v612_v13 = vand.u32 2147483647, %v2177_v2  ;;  %v1691_v25 = vmul.f32 0.6931472, %v855_v36  ;;  %v1702_v34 = vmul.f32 %v2174_v20, %v601_v1 }
  0x88   :  { %v859_v40 = vpop.eup %858  ;;  %v619_v19 = vadd.f32 1.0, %v618_v32  ;;  %v621_v18 = vand.u32 2147483647, %v2179_v14  ;;  %v636_v10 = vmul.f32 -0.5, %v2187_v55  ;;  %v1699_v43 = vmul.f32 0.6931472, %v857_v48 }
  0x89   :  { %v630_v60 = vand.u32 2147483647, %v2184_v23  ;;  %vm1705_vm14 = vcmp.lt.f32.partialorder %v603_v57, 0.0004427343  ;;  %v628_v32 = vadd.f32 1.0, %v627_v8  ;;  %864 = vlog2.f32 %v633_v44 }
  0x8a   :  { %v861_v30 = vpop.eup %860  ;;  %v639_v27 = vand.u32 2147483647, %v2187_v55  ;;  %v587_v48 = vsel %vm1662_vm5, %v1668_v22, %v1685_v12  ;;  %v1714_v41 = vmul.f32 0.6931472, %v859_v40  ;;  %v1717_v20 = vmul.f32 %v2177_v2, %v610_v11  ;;  %v2196_v11 = vld [vmem:[#allocation11_spill] sm:$0xff] }
  0x8b   :  { %vm1719_vm15 = vcmp.lt.f32.partialorder %v612_v13, 0.0004427343  ;;  %v596_v44 = vsel %vm1678_vm9, %v1688_v58, %v1691_v25  ;;  %v620_v8 = vmul.f32 %v2179_v14, %v619_v19  ;;  %vm1728_vm13 = vcmp.lt.f32.partialorder %v621_v18, 0.0004427343 }
  0x8c   :  { %v863_v57 = vpop.eup %862  ;;  %v637_v12 = vadd.f32 1.0, %v636_v10  ;;  %v605_v2 = vsel %vm1705_vm14, %v1702_v34, %v1699_v43  ;;  %v617_v22 = vmul.f32 0.6931472, %v861_v30  ;;  %vm1736_vm5 = vcmp.lt.f32.partialorder %v630_v60, 0.0004427343  ;;  %v2201_v43 = vld [vmem:[#allocation12_spill] sm:$0xff] }
  0x8d   :  { %v2197_v4 = vmax.f32 %v2196_v11, 0.0  ;;  %v2198_v25 = vsel %vm1305_vm0, %v1235_v56, %v1369_v7  ;;  %v629_v18 = vmul.f32 %v2184_v23, %v628_v32  ;;  %vm1748_vm9 = vcmp.lt.f32.partialorder %v639_v27, 0.0004427343  ;;  %v2205_v60 = vld [vmem:[#allocation13_spill] sm:$0xff]  ;;  %v2208_v30 = vld [vmem:[#allocation14_spill] sm:$0xff] }
  0x8e   :  { %v2202_v13 = vmax.f32 %v2201_v43, 0.0  ;;  %v2204_v10 = vsel %vm1315_vm1, %v1242_v52, %v1377_v28  ;;  %v2206_v35 = vmax.f32 %v2205_v60, 0.0  ;;  %v2207_v7 = vsel %vm1330_vm2, %v1252_v59, %v1396_v16  ;;  %v2210_v52 = vld [vmem:[#allocation43_spill] sm:$0xff]  ;;  %v2211_v28 = vld [vmem:[#allocation57_spill] sm:$0xff] }
  0x8f   :  { %v642_v58 = vadd.f32 %v2198_v25, %v2197_v4  ;;  %v614_v27 = vsel %vm1719_vm15, %v1717_v20, %v1714_v41  ;;  %v626_v23 = vmul.f32 0.6931472, %v863_v57  ;;  %v2209_v36 = vmax.f32 %v2208_v30, 0.0  ;;  %v2213_v4 = vld [vmem:[#allocation15_spill] sm:$0xff]  ;;  %v865_v25 = vpop.eup %864  ;;  %v2216_v20 = vld [vmem:[#allocation16_spill] sm:$0xff] }
  0x90   :  { %v643_v34 = vadd.f32 %v2204_v10, %v2202_v13  ;;  %v644_v56 = vadd.f32 %v2207_v7, %v2206_v35  ;;  %v2212_v32 = vsel %vm1341_vm3, %v2210_v52, %v2211_v28  ;;  %v2214_v17 = vmax.f32 %v2213_v4, 0.0  ;;  %v2221_v13 = vld [vmem:[#allocation17_spill] sm:$0xff]  ;;  %v2231_v30 = vld [vmem:[#allocation19_spill] sm:$0xff] }
  0x91   :  { %v645_v11 = vadd.f32 %v2212_v32, %v2209_v36  ;;  %v2215_v59 = vsel %vm1351_vm4, %v1270_v9, %v1421_v51  ;;  %v638_v41 = vmul.f32 %v2187_v55, %v637_v12  ;;  %v2217_v1 = vmax.f32 %v2216_v20, 0.0  ;;  %v2225_v51 = vld [vmem:[#allocation18_spill] sm:$0xff]  ;;  %v2228_v55 = vld [vmem:[#allocation47_spill] sm:$0xff]  ;;  %v2229_v12 = vld [vmem:[#allocation60_spill] sm:$0xff] }
  0x92   :  { %v646_v16 = vadd.f32 %v2215_v59, %v2214_v17  ;;  %vm2218_vm0 = vnez %v2101_v24  ;;  %v2222_v19 = vmax.f32 %v2221_v13, 0.0  ;;  %v2226_v60 = vmax.f32 %v2225_v51, 0.0  ;;  %v2238_v17 = vld [vmem:[#allocation21_spill] sm:$0xff]  ;;  %v2245_v20 = vld [vmem:[#allocation62_spill] sm:$0xff] }
  0x93   :  { %v2220_v57 = vsel %vm2218_vm0, %v1280_v47, %v2219_v37  ;;  %v2230_v7 = vsel %vm1371_vm7, %v2228_v55, %v2229_v12  ;;  %v623_v47 = vsel %vm1728_vm13, %v620_v8, %v617_v22  ;;  %v2232_v36 = vmax.f32 %v2231_v30, 0.0  ;;  %v2247_v37 = vld [vmem:[#allocation23_spill] sm:$0xff] }
  0x94   :  { %v647_v43 = vadd.f32 %v2220_v57, %v2217_v1  ;;  %v648_v9 = vadd.f32 %v2224_v29, %v2222_v19  ;;  %v649_v24 = vadd.f32 %v2230_v7, %v2226_v60  ;;  %v2233_v52 = vsel %vm1379_vm8, %v1320_v54, %v1450_v0  ;;  %v2244_v0 = vld [vmem:[#allocation53_spill] sm:$0xff]  ;;  %v2252_v19 = vld [vmem:[#allocation24_spill] sm:$0xff]  ;;  %v2259_v60 = vld [vmem:[#allocation66_spill] sm:$0xff] }
  0x95   :  { %v650_v6 = vadd.f32 %v2233_v52, %v2232_v36  ;;  %v2235_v28 = vmax.f32 %v2234_v21, 0.0  ;;  %vm2236_vm1 = vnez %v2113_v33  ;;  %v2239_v59 = vmax.f32 %v2238_v17, 0.0  ;;  %v2256_v29 = vld [vmem:[#allocation25_spill] sm:$0xff]  ;;  %v2261_v7 = vld [vmem:[#allocation26_spill] sm:$0xff]  ;;  %v2266_v52 = vld [vmem:[#allocation67_spill] sm:$0xff] }
  0x96   :  { %v2237_v32 = vsel %vm2236_vm1, %v1335_v31, %v1469_v61  ;;  %v2240_v8 = vsel %vm1398_vm10, %v1346_v53, %v1476_v5  ;;  %v2242_v22 = vmax.f32 %v2241_v3, 0.0  ;;  %v2246_v1 = vsel %vm1402_vm11, %v2244_v0, %v2245_v20  ;;  %v2249_v31 = vld [vmem:[#allocation55_spill] sm:$0xff]  ;;  %v2250_v61 = vld [vmem:[#allocation64_spill] sm:$0xff]  ;;  %v2263_v36 = vld [vmem:[#allocation61_spill] sm:$0xff] }
  0x97   :  { %v651_v4 = vadd.f32 %v2237_v32, %v2235_v28  ;;  %v652_v63 = vadd.f32 %v2240_v8, %v2239_v59  ;;  %v2248_v57 = vmax.f32 %v2247_v37, 0.0  ;;  %v2251_v13 = vsel %vm1425_vm12, %v2249_v31, %v2250_v61  ;;  %v2268_v28 = vld [vmem:[#allocation27_spill] sm:$0xff]  ;;  %v2272_v17 = vld [vmem:[#allocation65_spill] sm:$0xff]  ;;  %v2279_v54 = vld [vmem:[#allocation70_spill] sm:$0xff] }
  0x98   :  { %v653_v33 = vadd.f32 %v2246_v1, %v2242_v22  ;;  %v2253_v10 = vmax.f32 %v2252_v19, 0.0  ;;  %vm2254_vm2 = vnez %v2124_v42  ;;  %v2257_v51 = vmax.f32 %v2256_v29, 0.0  ;;  %v2265_v42 = vld [vmem:[#allocation59_spill] sm:$0xff]  ;;  %v2277_v22 = vld [vmem:[#allocation68_spill] sm:$0xff]  ;;  %v2287_v31 = vld [vmem:[#allocation73_spill] sm:$0xff] }
  0x99   :  { %v654_v50 = vadd.f32 %v2251_v13, %v2248_v57  ;;  %v2255_v53 = vsel %vm2254_vm2, %v1392_v62, %v1503_v15  ;;  %vm2258_vm3 = vnez %v2128_v45  ;;  %v632_v55 = vsel %vm1736_vm5, %v629_v18, %v626_v23  ;;  %v2270_v45 = vld [vmem:[#allocation63_spill] sm:$0xff]  ;;  %v2284_v37 = vld [vmem:[#allocation72_spill] sm:$0xff]  ;;  %v2286_v57 = vld [vmem:[#allocation74_spill] sm:$0xff] }
  0x9a   :  { %v655_v5 = vadd.f32 %v2255_v53, %v2253_v10  ;;  %v2260_v35 = vsel %vm2258_vm3, %v1407_v26, %v2259_v60  ;;  %v635_v12 = vmul.f32 0.6931472, %v865_v25  ;;  %v2262_v30 = vmax.f32 %v2261_v7, 0.0  ;;  %v2273_v26 = vld [vmem:[#allocation69_spill] sm:$0xff]  ;;  %v2275_v25 = vld [vmem:[#allocation28_spill] sm:$0xff]  ;;  %v2280_v0 = vld [vmem:[#allocation71_spill] sm:$0xff] }
  0x9b   :  { %v656_v38 = vadd.f32 %v2260_v35, %v2257_v51  ;;  %vm2264_vm4 = vnez %v2263_v36  ;;  %v674_v21 = vadd.f32 %v646_v16, %v642_v58  ;;  %v2269_v32 = vmax.f32 %v2268_v28, 0.0  ;;  %v2282_v58 = vld [vmem:[#allocation29_spill] sm:$0xff]  ;;  %v2289_v19 = vld [vmem:[#allocation30_spill] sm:$0xff]  ;;  %v2296_v53 = vld [vmem:[#allocation31_spill] sm:$0xff] }
  0x9c   :  { %v2267_v62 = vsel %vm2264_vm4, %v2265_v42, %v2266_v52  ;;  %vm2271_vm6 = vnez %v2270_v45  ;;  %v681_v40 = vadd.f32 %v647_v43, %v643_v34  ;;  %v688_v18 = vadd.f32 %v648_v9, %v644_v56  ;;  %v2291_v56 = vld [vmem:[#allocation76_spill] sm:$0xff]  ;;  %v2294_v43 = vld [vmem:[#allocation77_spill] sm:$0xff]  ;;  %v2298_v51 = vld [vmem:[#allocation78_spill] sm:$0xff] }
  0x9d   :  { %v657_v15 = vadd.f32 %v2267_v62, %v2262_v30  ;;  %v2274_v59 = vsel %vm2271_vm6, %v2272_v17, %v2273_v26  ;;  %v695_v23 = vadd.f32 %v649_v24, %v645_v11  ;;  %v2276_v3 = vmax.f32 %v2275_v25, 0.0  ;;  %v2293_v11 = vld [vmem:[#allocation75_spill] sm:$0xff]  ;;  %v2300_v60 = vld [vmem:[#allocation80_spill] sm:$0xff]  ;;  %v2305_v45 = vld [vmem:[#allocation82_spill] sm:$0xff] }
  0x9e   :  { %v658_v8 = vadd.f32 %v2274_v59, %v2269_v32  ;;  %vm2278_vm7 = vnez %v2277_v22  ;;  %v2283_v16 = vmax.f32 %v2282_v58, 0.0  ;;  %vm2285_vm8 = vnez %v2284_v37  ;;  %v2301_v35 = vld [vmem:[#allocation79_spill] sm:$0xff]  ;;  %v2303_v28 = vld [vmem:[#allocation32_spill] sm:$0xff]  ;;  %v2307_v17 = vld [vmem:[#allocation81_spill] sm:$0xff] }
  0x9f   :  { %v2281_v20 = vsel %vm2278_vm7, %v2279_v54, %v2280_v0  ;;  %v2288_v61 = vsel %vm2285_vm8, %v2286_v57, %v2287_v31  ;;  %v2290_v34 = vmax.f32 %v2289_v19, 0.0  ;;  %vm2292_vm10 = vnez %v2291_v56  ;;  %v2310_v59 = vld [vmem:[#allocation33_spill] sm:$0xff]  ;;  %v2314_v22 = vld [vmem:[#allocation84_spill] sm:$0xff]  ;;  %v2324_v37 = vld [vmem:[#allocation35_spill] sm:$0xff] }
  0xa0   :  { %v659_v1 = vadd.f32 %v2281_v20, %v2276_v3  ;;  %v660_v13 = vadd.f32 %v2288_v61, %v2283_v16  ;;  %v2295_v9 = vsel %vm2292_vm10, %v2293_v11, %v2294_v43  ;;  %v675_v10 = vadd.f32 %v674_v21, %v650_v6  ;;  %v2308_v6 = vld [vmem:[#allocation44_spill] sm:$0xff]  ;;  %v2312_v3 = vld [vmem:[#allocation83_spill] sm:$0xff]  ;;  %v2315_v54 = vld [vmem:[#allocation45_spill] sm:$0xff] }
  0xa1   :  { %v661_v24 = vadd.f32 %v2295_v9, %v2290_v34  ;;  %v2297_v29 = vmax.f32 %v2296_v53, 0.0  ;;  %vm2299_vm11 = vnez %v2298_v51  ;;  %v682_v36 = vadd.f32 %v681_v40, %v651_v4  ;;  %v2317_v40 = vld [vmem:[#allocation34_spill] sm:$0xff]  ;;  %v2330_v56 = vld [vmem:[#allocation37_spill] sm:$0xff]  ;;  %v2334_v51 = vld [vmem:[#allocation39_spill] sm:$0xff] }
  0xa2   :  { %v2302_v7 = vsel %vm2299_vm11, %v2300_v60, %v2301_v35  ;;  %v689_v42 = vadd.f32 %v688_v18, %v652_v63  ;;  %v696_v52 = vadd.f32 %v695_v23, %v653_v33  ;;  %v641_v62 = vsel %vm1748_vm9, %v638_v41, %v635_v12  ;;  %v2319_v41 = vld [vmem:[#allocation85_spill] sm:$0xff]  ;;  %v2321_v12 = vld [vmem:[#allocation86_spill] sm:$0xff]  ;;  %v2336_v35 = vld [vmem:[#allocation40_spill] sm:$0xff] }
  0xa3   :  { %v662_v30 = vadd.f32 %v2302_v7, %v2297_v29  ;;  %v2304_v32 = vmax.f32 %v2303_v28, 0.0  ;;  %vm2306_vm12 = vnez %v2305_v45  ;;  %v2311_v25 = vmax.f32 %v2310_v59, 0.0  ;;  %v2322_v18 = vld [vmem:[#allocation46_spill] sm:$0xff] }
  0xa4   :  { %v2309_v21 = vsel %vm2306_vm12, %v2307_v17, %v2308_v6  ;;  %vm2313_vm13 = vnez %v2312_v3  ;;  %v676_v33 = vadd.f32 %v675_v10, %v654_v50  ;;  %v2318_v14 = vmax.f32 %v2317_v40, 0.0  ;;  %v2328_v50 = vld [vmem:[#allocation36_spill] sm:$0xff]  ;;  %v2332_v10 = vld [vmem:[#allocation38_spill] sm:$0xff] }
  0xa5   :  { %v663_v26 = vadd.f32 %v2309_v21, %v2304_v32  ;;  %v2316_v4 = vsel %vm2313_vm13, %v2314_v22, %v2315_v54  ;;  %vm2320_vm14 = vnez %v2319_v41  ;;  %v683_v20 = vadd.f32 %v682_v36, %v655_v5 }
  0xa6   :  { %v664_v63 = vadd.f32 %v2316_v4, %v2311_v25  ;;  %v2323_v23 = vsel %vm2320_vm14, %v2321_v12, %v2322_v18  ;;  %v690_v58 = vadd.f32 %v689_v42, %v656_v38  ;;  %v697_v16 = vadd.f32 %v696_v52, %v657_v15  ;;  %v2340_v52 = vld [vmem:[#allocation42_spill] sm:$0xff] }
  0xa7   :  { %v665_v0 = vadd.f32 %v2323_v23, %v2318_v14  ;;  %v2325_v57 = vmax.f32 %v2324_v37, 0.0  ;;  %vm2326_vm15 = vnez %v2181_v39  ;;  %v2329_v19 = vmax.f32 %v2328_v50, 0.0 }
  0xa8   :  { %v2327_v31 = vsel %vm2326_vm15, %v1652_v46, %v1676_v49  ;;  %v2331_v11 = vmax.f32 %v2330_v56, 0.0  ;;  %v677_v9 = vadd.f32 %v676_v33, %v658_v8  ;;  %v2333_v53 = vmax.f32 %v2332_v10, 0.0  ;;  %v2338_v49 = vld [vmem:[#allocation41_spill] sm:$0xff] }
  0xa9   :  { %v666_v61 = vadd.f32 %v2327_v31, %v2325_v57  ;;  %v667_v34 = vadd.f32 %v587_v48, %v2329_v19  ;;  %v684_v38 = vadd.f32 %v683_v20, %v659_v1  ;;  %v691_v15 = vadd.f32 %v690_v58, %v660_v13 }
  0xaa   :  { %v668_v43 = vadd.f32 %v596_v44, %v2331_v11  ;;  %v669_v5 = vadd.f32 %v605_v2, %v2333_v53  ;;  %v698_v29 = vadd.f32 %v697_v16, %v661_v24  ;;  %v2335_v60 = vmax.f32 %v2334_v51, 0.0 }
  0xab   :  { %v2337_v7 = vmax.f32 %v2336_v35, 0.0  ;;  %v2339_v36 = vmax.f32 %v2338_v49, 0.0  ;;  %v678_v48 = vadd.f32 %v677_v9, %v662_v30  ;;  %v2341_v28 = vmax.f32 %v2340_v52, 0.0 }
  0xac   :  { %v670_v39 = vadd.f32 %v614_v27, %v2335_v60  ;;  %v685_v8 = vadd.f32 %v684_v38, %v663_v26  ;;  %v692_v32 = vadd.f32 %v691_v15, %v664_v63  ;;  %v699_v45 = vadd.f32 %v698_v29, %v665_v0 }
  0xad   :  { %v671_v46 = vadd.f32 %v623_v47, %v2337_v7  ;;  %v672_v42 = vadd.f32 %v632_v55, %v2339_v36  ;;  %v673_v44 = vadd.f32 %v641_v62, %v2341_v28  ;;  %v679_v2 = vadd.f32 %v678_v48, %v666_v61 }
  0xae   :  { %v686_v1 = vadd.f32 %v685_v8, %v667_v34  ;;  %v693_v13 = vadd.f32 %v692_v32, %v668_v43  ;;  %v700_v24 = vadd.f32 %v699_v45, %v669_v5 }
  0xaf   :  { %v680_v17 = vadd.f32 %v679_v2, %v670_v39 }
  0xb0   :  { %v687_v6 = vadd.f32 %v686_v1, %v671_v46  ;;  %v694_v27 = vadd.f32 %v693_v13, %v672_v42  ;;  %v701_v21 = vadd.f32 %v700_v24, %v673_v44 }
  0xb1   :  { %710 = vst [vmem:[#allocation7] sm:$0xff] %v680_v17 }
  0xb2   :  { %711 = vst [vmem:[#allocation7 + $0x8] sm:$0xff] %v687_v6 }
  0xb3   :  { %712 = vst [vmem:[#allocation7 + $0x10] sm:$0xff] %v694_v27 }
  0xb4   :  { %713 = vst [vmem:[#allocation7 + $0x18] sm:$0xff] %v701_v21 }
  0xb5   :  { %724 = dma.vmem_to_hbm [thread:$0]  %s720_s1, 512, %s722_s23, [#allocation4]  }
  0xb6   :  { %942 = dma.done.wait [#allocation4], 512  }
  0xb7   :  { %943 = vsyncadd [#allocation4], 4294966784 }
  0xb8   :  { %729 = vsyncpa [#allocation3], 1 }
  0xb9   :  { %730 = vsyncpa [#allocation6], 1 }
  0xba   :  { %731 = vsyncpa [#allocation4], 1 }

</bundles_post_ra>
